<compile_context>
chip_gen: v7x
topology: tpu7x:2x2x1
jax: 0.10.0
libtpu: 0.0.40
codegen_flags: <defaults>
</compile_context>

<pallas_src>
import math
import functools

import jax
import jax.numpy as jnp
from jax import lax
from jax.experimental import pallas as pl
from jax.experimental.pallas import tpu as pltpu


_UNROLL_MAX = 32  # fully unroll the GRU recurrence for prefixes up to this length


def _sigmoid(x):
    # explicit form (exp on EUP) — avoids relying on lax.logistic lowering
    return 1.0 / (1.0 + jnp.exp(-x))


# ----------------------------------------------------------------------------
# Pallas kernel: adaptive-normalize -> fused input path -> GRU -> MLP head
# ----------------------------------------------------------------------------
def _rnn_coeff_kernel(
    x_ref,       # (S, 1)        raw prefix
    p_ref,       # (3H+5, 3H)    packed parameters (single DMA)
    out_ref,     # (1, 1)        output
    gis_ref,     # scratch VMEM (S, 3H): gi rows for the rolled (large-S) path only
):
    S = x_ref.shape[0]
    W = p_ref.shape[1]
    H = W // 3
    H2 = H // 2
    S_f = float(S)

    # ---- unpack the packed parameter buffer -------------------------------
    # rows [0,H): W_ih^T   rows [H,2H): W_hh^T   rows [2H,3H): W1^T (cols [0,H2))
    # row 3H: b_ih  row 3H+1: b_hh  row 3H+2: w_ip  row 3H+3: b_ip
    # row 3H+4: [b1 | w2 | b2 | 0...]
    w_ih = p_ref[0:H, :]                         # (H, 3H)
    w_hh = p_ref[H:2 * H, :]                     # (H, 3H)
    w1_full = p_ref[2 * H:3 * H, :]              # (H, 3H)
    w1 = w1_full[:, 0:H2]                        # (H, H2)
    tail = p_ref[3 * H:3 * H + 5, :]             # (5, 3H)
    b_ih = tail[0:1, :]                          # (1, 3H)
    b_hh = tail[1:2, :]                          # (1, 3H)
    ip_rows = tail[2:4, 0:H]                     # (2, H)  rows: [w_ip ; b_ip]
    head_row = tail[4:5, :]                      # (1, 3H)
    b1 = head_row[:, 0:H2]                       # (1, H2)
    w2 = head_row[:, H2:2 * H2]                  # (1, H2)
    b2 = head_row[:, 2 * H2:2 * H2 + 1]          # (1, 1)

    # ---- adaptive normalization (mirrors _adaptive_normalize) -------------
    x = x_ref[...]                               # (S, 1) f32
    abs_x = jnp.abs(x)
    nonzero_count = jnp.sum((abs_x > 1e-8).astype(jnp.float32), keepdims=True)  # (1,1)
    use_maxabs = nonzero_count < (S_f * 0.2)

    # sparse branch: scale by max |x|
    max_abs = jnp.max(abs_x, keepdims=True)                                      # (1,1)
    x_maxn = jnp.where(max_abs > 1e-8, x / (max_abs + 1e-8), x)

    # dense branch: standard normalize (torch.std -> unbiased, ddof=1)
    mean = jnp.sum(x, keepdims=True) / S_f
    centered = x - mean
    var = jnp.sum(centered * centered, keepdims=True) / (S_f - 1.0)
    std = jnp.sqrt(var)
    x_stdn = jnp.where(std > 1e-8, centered / (std + 1e-8), x)

    x_norm = jnp.where(use_maxabs, x_maxn, x_stdn)                               # (S,1)

    # ---- fused input path: hoist input-to-hidden matmul out of the loop ----
    # gi_all[s] = (x_norm[s]*w_ip + b_ip) @ W_ih + b_ih
    #           = x_norm[s] * (w_ip @ W_ih) + (b_ip @ W_ih + b_ih)
    vc = jnp.dot(ip_rows, w_ih, preferred_element_type=jnp.float32)              # (2, 3H)
    v = vc[0:1, :]                                                               # (1, 3H)
    c = vc[1:2, :] + b_ih                                                        # (1, 3H)
    gi_all = x_norm * v + c                                                      # (S, 3H)
    gi_r = gi_all[:, 0:H]
    gi_z = gi_all[:, H:2 * H]
    gi_n = gi_all[:, 2 * H:3 * H]

    # ---- GRU recurrence: only the h-dependent matmul is inside the loop ----
    def gru_step(h_prev, gir_t, giz_t, gin_t):
        gh = jnp.dot(h_prev, w_hh, preferred_element_type=jnp.float32) + b_hh    # (1,3H)
        r = _sigmoid(gir_t + gh[:, 0:H])
        z = _sigmoid(giz_t + gh[:, H:2 * H])
        n = jnp.tanh(gin_t + r * gh[:, 2 * H:3 * H])
        return (1.0 - z) * n + z * h_prev

    h = jnp.zeros((1, H), jnp.float32)
    if S <= _UNROLL_MAX:
        # fully unrolled: h lives in vregs, gi slices are static
        for t in range(S):
            h = gru_step(h, gi_r[t:t + 1, :], gi_z[t:t + 1, :], gi_n[t:t + 1, :])
    else:
        # rolled fallback for long prefixes: gi rows staged in VMEM scratch
        gis_ref[...] = gi_all

        def body(t, h_carry):
            gi_t = gis_ref[pl.ds(t, 1), :]                                       # (1,3H)
            return gru_step(h_carry, gi_t[:, 0:H], gi_t[:, H:2 * H],
                            gi_t[:, 2 * H:3 * H])

        h = lax.fori_loop(0, S, body, h)

    # ---- output head: Linear(H, H//2) -> ReLU -> Linear(H//2, 1) ----------
    hid = jnp.maximum(
        jnp.dot(h, w1, preferred_element_type=jnp.float32) + b1, 0.0)            # (1,H2)
    out_ref[...] = jnp.sum(hid * w2, axis=-1, keepdims=True) + b2                # (1,1)


# ----------------------------------------------------------------------------
# Wrapper
# ----------------------------------------------------------------------------
@jax.jit
def rnn_coeff_forward(prefix, packed):
    """prefix: (S,) float32.  packed: (3H+5, 3H) packed params.  Returns (1,)."""
    S = prefix.shape[0]
    H = packed.shape[1] // 3

    x = prefix.reshape(S, 1).astype(jnp.float32)
    vmem = pltpu.MemorySpace.VMEM

    out = pl.pallas_call(
        _rnn_coeff_kernel,
        out_shape=jax.ShapeDtypeStruct((1, 1), jnp.float32),
        in_specs=[pl.BlockSpec(memory_space=vmem),
                  pl.BlockSpec(memory_space=vmem)],
        out_specs=pl.BlockSpec(memory_space=vmem),
        scratch_shapes=[
            pltpu.VMEM((S, 3 * H), jnp.float32),   # gi rows (rolled path only)
        ],
    )(x, packed)
    return out.reshape(1)  # matches PyTorch output shape (1,)


# ----------------------------------------------------------------------------
# Deterministic parameter construction (xavier_uniform, matching __init__ shapes)
# ----------------------------------------------------------------------------
def _xavier_uniform(key, shape, gain):
    fan_out, fan_in = shape[0], shape[1]
    a = gain * math.sqrt(6.0 / (fan_in + fan_out))
    return jax.random.uniform(key, shape, jnp.float32, minval=-a, maxval=a)


def make_params(key, hidden_size=32, init_scale=0.1):
    H = hidden_size
    H2 = H // 2
    k = jax.random.split(key, 6)

    # input_proj: Linear(1, H)      weight (H, 1), bias 0
    w_ip = _xavier_uniform(k[0], (H, 1), init_scale)
    # GRU weights: weight_ih_l0 (3H, H), weight_hh_l0 (3H, H); biases 0
    w_ih = _xavier_uniform(k[1], (3 * H, H), init_scale)
    w_hh = _xavier_uniform(k[2], (3 * H, H), init_scale)
    # output head (re-initialized with gain = init_scale * 0.1)
    w1 = _xavier_uniform(k[3], (H2, H), init_scale * 0.1)
    w2 = _xavier_uniform(k[4], (1, H2), init_scale * 0.1)

    return {
        "w_ip": w_ip.T,                               # (1, H)
        "b_ip": jnp.zeros((1, H), jnp.float32),
        "w_ih": w_ih.T,                               # (H, 3H)
        "w_hh": w_hh.T,                               # (H, 3H)
        "b_ih": jnp.zeros((1, 3 * H), jnp.float32),
        "b_hh": jnp.zeros((1, 3 * H), jnp.float32),
        "w1": w1.T,                                   # (H, H2)
        "b1": jnp.zeros((1, H2), jnp.float32),
        "w2": w2,                                     # (1, H2)
        "b2": jnp.zeros((1, 1), jnp.float32),
    }


def pack_params(params):
    """Pack all parameters into one (3H+5, 3H) f32 buffer (single DMA)."""
    H = params["w_ih"].shape[0]
    H2 = params["w1"].shape[1]
    Wp = 3 * H

    w1p = jnp.zeros((H, Wp), jnp.float32).at[:, :H2].set(params["w1"])
    r_wip = jnp.zeros((1, Wp), jnp.float32).at[:, :H].set(params["w_ip"])
    r_bip = jnp.zeros((1, Wp), jnp.float32).at[:, :H].set(params["b_ip"])
    r_head = jnp.zeros((1, Wp), jnp.float32)
    r_head = r_head.at[:, :H2].set(params["b1"])
    r_head = r_head.at[:, H2:2 * H2].set(params["w2"])
    r_head = r_head.at[:, 2 * H2:2 * H2 + 1].set(params["b2"])

    return jnp.concatenate(
        [params["w_ih"],     # rows [0, H)
         params["w_hh"],     # rows [H, 2H)
         w1p,                # rows [2H, 3H)
         params["b_ih"],     # row 3H
         params["b_hh"],     # row 3H+1
         r_wip,              # row 3H+2
         r_bip,              # row 3H+3
         r_head],            # row 3H+4
        axis=0).astype(jnp.float32)


# ----------------------------------------------------------------------------
# Pure-JAX reference (same math as the PyTorch module) for a correctness check
# ----------------------------------------------------------------------------
def reference_forward(prefix, params):
    x = prefix.astype(jnp.float32)
    S = x.shape[0]
    H = params["w_ih"].shape[1] // 3

    abs_x = jnp.abs(x)
    nz = jnp.sum((abs_x > 1e-8).astype(jnp.float32))
    use_max = nz < (S * 0.2)
    max_abs = jnp.max(abs_x)
    x_maxn = jnp.where(max_abs > 1e-8, x / (max_abs + 1e-8), x)
    mean = jnp.mean(x)
    std = jnp.sqrt(jnp.sum((x - mean) ** 2) / (S - 1.0))
    x_stdn = jnp.where(std > 1e-8, (x - mean) / (std + 1e-8), x)
    x_norm = jnp.where(use_max, x_maxn, x_stdn)

    xp = x_norm[:, None] * params["w_ip"] + params["b_ip"]   # (S, H)

    def step(h, x_t):
        gi = x_t[None, :] @ params["w_ih"] + params["b_ih"]
        gh = h @ params["w_hh"] + params["b_hh"]
        r = _sigmoid(gi[:, 0:H] + gh[:, 0:H])
        z = _sigmoid(gi[:, H:2 * H] + gh[:, H:2 * H])
        n = jnp.tanh(gi[:, 2 * H:3 * H] + r * gh[:, 2 * H:3 * H])
        return (1.0 - z) * n + z * h, None

    h, _ = lax.scan(step, jnp.zeros((1, H), jnp.float32), xp)
    hid = jnp.maximum(h @ params["w1"] + params["b1"], 0.0)
    out = jnp.sum(hid * params["w2"]) + params["b2"][0, 0]
    return out.reshape(1)


# ----------------------------------------------------------------------------
if __name__ == "__main__":
    key = jax.random.PRNGKey(0)
    k_param, k_data = jax.random.split(key)

    HIDDEN = 32   # small hidden size consistent with the module (default 128)
    SEQ = 8       # variable-length prefix length (S >= 2)

    params = make_params(k_param, hidden_size=HIDDEN, init_scale=0.1)
    packed = pack_params(params)
    prefix = jax.random.normal(k_data, (SEQ,), jnp.float32)

    out = rnn_coeff_forward(prefix, packed)
    out = jax.block_until_ready(out)

    ref = reference_forward(prefix, params)
    assert out.shape == (1,)
    assert bool(jnp.allclose(out, ref, atol=1e-5, rtol=1e-3)), (out, ref)

    print("KERNEL_OK")
</pallas_src>

<mosaic_0001>
module attributes {stable_mosaic.version = 11 : i64} {
  func.func @_rnn_coeff_kernel(%arg0: memref<8x1xf32, #tpu.memory_space<vmem>>, %arg1: memref<101x96xf32, #tpu.memory_space<vmem>>, %arg2: memref<1x1xf32, #tpu.memory_space<vmem>>, %arg3: memref<8x96xf32, #tpu.memory_space<vmem>>) attributes {dimension_semantics = [], scalar_prefetch = 0 : i64, scratch_operands = 1 : i64, tpu.core_type = #tpu.core_type<tc>} {
    %c0 = arith.constant 0 : index
    %c0_0 = arith.constant 0 : index
    %0 = vector.load %arg1[%c0, %c0_0] : memref<101x96xf32, #tpu.memory_space<vmem>>, vector<32x96xf32>
    %c32 = arith.constant 32 : index
    %c0_1 = arith.constant 0 : index
    %1 = vector.load %arg1[%c32, %c0_1] : memref<101x96xf32, #tpu.memory_space<vmem>>, vector<32x96xf32>
    %c64 = arith.constant 64 : index
    %c0_2 = arith.constant 0 : index
    %2 = vector.load %arg1[%c64, %c0_2] : memref<101x96xf32, #tpu.memory_space<vmem>>, vector<32x96xf32>
    %3 = vector.extract_strided_slice %2 {offsets = [0, 0], sizes = [32, 16], strides = [1, 1]} : vector<32x96xf32> to vector<32x16xf32>
    %c96 = arith.constant 96 : index
    %c0_3 = arith.constant 0 : index
    %4 = vector.load %arg1[%c96, %c0_3] : memref<101x96xf32, #tpu.memory_space<vmem>>, vector<5x96xf32>
    %5 = vector.extract_strided_slice %4 {offsets = [0, 0], sizes = [1, 96], strides = [1, 1]} : vector<5x96xf32> to vector<1x96xf32>
    %6 = vector.extract_strided_slice %4 {offsets = [1, 0], sizes = [1, 96], strides = [1, 1]} : vector<5x96xf32> to vector<1x96xf32>
    %7 = vector.extract_strided_slice %4 {offsets = [2, 0], sizes = [2, 32], strides = [1, 1]} : vector<5x96xf32> to vector<2x32xf32>
    %8 = vector.extract_strided_slice %4 {offsets = [4, 0], sizes = [1, 96], strides = [1, 1]} : vector<5x96xf32> to vector<1x96xf32>
    %9 = vector.extract_strided_slice %8 {offsets = [0, 0], sizes = [1, 16], strides = [1, 1]} : vector<1x96xf32> to vector<1x16xf32>
    %10 = vector.extract_strided_slice %8 {offsets = [0, 16], sizes = [1, 16], strides = [1, 1]} : vector<1x96xf32> to vector<1x16xf32>
    %11 = vector.extract_strided_slice %8 {offsets = [0, 32], sizes = [1, 1], strides = [1, 1]} : vector<1x96xf32> to vector<1x1xf32>
    %c0_4 = arith.constant 0 : index
    %c0_5 = arith.constant 0 : index
    %12 = vector.load %arg0[%c0_4, %c0_5] : memref<8x1xf32, #tpu.memory_space<vmem>>, vector<8x1xf32>
    %13 = math.absf %12 : vector<8x1xf32>
    %cst = arith.constant 9.99999993E-9 : f32
    %14 = vector.broadcast %cst : f32 to vector<8x1xf32>
    %15 = arith.cmpf ogt, %13, %14 : vector<8x1xf32>
    %16 = arith.extui %15 : vector<8x1xi1> to vector<8x1xi32>
    %17 = arith.sitofp %16 : vector<8x1xi32> to vector<8x1xf32>
    %18 = vector.shape_cast %17 : vector<8x1xf32> to vector<1x8x1xf32>
    %cst_6 = arith.constant dense<0.000000e+00> : vector<1xf32>
    %19 = vector.multi_reduction <add>, %18, %cst_6 [1, 2] : vector<1x8x1xf32> to vector<1xf32>
    %20 = vector.shape_cast %19 : vector<1xf32> to vector<1x1x1xf32>
    %21 = vector.extract %20[0, 0, 0] : f32 from vector<1x1x1xf32>
    %22 = vector.broadcast %21 : f32 to vector<1x1xf32>
    %cst_7 = arith.constant 1.600000e+00 : f32
    %23 = vector.broadcast %cst_7 : f32 to vector<1x1xf32>
    %24 = arith.cmpf olt, %22, %23 : vector<1x1xf32>
    %25 = vector.shape_cast %13 : vector<8x1xf32> to vector<1x8x1xf32>
    %cst_8 = arith.constant dense<0xFF800000> : vector<1xf32>
    %26 = vector.multi_reduction <maximumf>, %25, %cst_8 [1, 2] : vector<1x8x1xf32> to vector<1xf32>
    %27 = vector.shape_cast %26 : vector<1xf32> to vector<1x1x1xf32>
    %28 = vector.extract %27[0, 0, 0] : f32 from vector<1x1x1xf32>
    %29 = vector.broadcast %28 : f32 to vector<1x1xf32>
    %cst_9 = arith.constant 9.99999993E-9 : f32
    %30 = vector.broadcast %cst_9 : f32 to vector<1x1xf32>
    %31 = arith.cmpf ogt, %29, %30 : vector<1x1xf32>
    %cst_10 = arith.constant 9.99999993E-9 : f32
    %32 = vector.broadcast %cst_10 : f32 to vector<1x1xf32>
    %33 = arith.addf %29, %32 : vector<1x1xf32>
    %34 = vector.broadcast %33 : vector<1x1xf32> to vector<8x1xf32>
    %35 = arith.divf %12, %34 : vector<8x1xf32>
    %36 = vector.shape_cast %31 : vector<1x1xi1> to vector<1x1xi1>
    %37 = vector.broadcast %36 : vector<1x1xi1> to vector<8x1xi1>
    %38 = arith.select %37, %35, %12 : vector<8x1xi1>, vector<8x1xf32>
    %39 = vector.shape_cast %12 : vector<8x1xf32> to vector<1x8x1xf32>
    %cst_11 = arith.constant dense<0.000000e+00> : vector<1xf32>
    %40 = vector.multi_reduction <add>, %39, %cst_11 [1, 2] : vector<1x8x1xf32> to vector<1xf32>
    %41 = vector.shape_cast %40 : vector<1xf32> to vector<1x1x1xf32>
    %42 = vector.extract %41[0, 0, 0] : f32 from vector<1x1x1xf32>
    %43 = vector.broadcast %42 : f32 to vector<1x1xf32>
    %cst_12 = arith.constant 8.000000e+00 : f32
    %44 = vector.broadcast %cst_12 : f32 to vector<1x1xf32>
    %45 = arith.divf %43, %44 : vector<1x1xf32>
    %46 = vector.broadcast %45 : vector<1x1xf32> to vector<8x1xf32>
    %47 = arith.subf %12, %46 : vector<8x1xf32>
    %48 = arith.mulf %47, %47 : vector<8x1xf32>
    %49 = vector.shape_cast %48 : vector<8x1xf32> to vector<1x8x1xf32>
    %cst_13 = arith.constant dense<0.000000e+00> : vector<1xf32>
    %50 = vector.multi_reduction <add>, %49, %cst_13 [1, 2] : vector<1x8x1xf32> to vector<1xf32>
    %51 = vector.shape_cast %50 : vector<1xf32> to vector<1x1x1xf32>
    %52 = vector.extract %51[0, 0, 0] : f32 from vector<1x1x1xf32>
    %53 = vector.broadcast %52 : f32 to vector<1x1xf32>
    %cst_14 = arith.constant 7.000000e+00 : f32
    %54 = vector.broadcast %cst_14 : f32 to vector<1x1xf32>
    %55 = arith.divf %53, %54 : vector<1x1xf32>
    %56 = math.sqrt %55 : vector<1x1xf32>
    %cst_15 = arith.constant 9.99999993E-9 : f32
    %57 = vector.broadcast %cst_15 : f32 to vector<1x1xf32>
    %58 = arith.cmpf ogt, %56, %57 : vector<1x1xf32>
    %cst_16 = arith.constant 9.99999993E-9 : f32
    %59 = vector.broadcast %cst_16 : f32 to vector<1x1xf32>
    %60 = arith.addf %56, %59 : vector<1x1xf32>
    %61 = vector.broadcast %60 : vector<1x1xf32> to vector<8x1xf32>
    %62 = arith.divf %47, %61 : vector<8x1xf32>
    %63 = vector.shape_cast %58 : vector<1x1xi1> to vector<1x1xi1>
    %64 = vector.broadcast %63 : vector<1x1xi1> to vector<8x1xi1>
    %65 = arith.select %64, %62, %12 : vector<8x1xi1>, vector<8x1xf32>
    %66 = vector.shape_cast %24 : vector<1x1xi1> to vector<1x1xi1>
    %67 = vector.broadcast %66 : vector<1x1xi1> to vector<8x1xi1>
    %68 = arith.select %67, %38, %65 : vector<8x1xi1>, vector<8x1xf32>
    %cst_17 = arith.constant dense<0.000000e+00> : vector<2x96xf32>
    %69 = tpu.matmul %7, %0, %cst_17 {dimension_numbers = #tpu.dot_dimension_numbers<[1], [0], [0], [1], [0, 0, 1, 1], [], []>} : vector<2x32xf32>, vector<32x96xf32>, vector<2x96xf32> -> vector<2x96xf32>
    %70 = vector.extract_strided_slice %69 {offsets = [0, 0], sizes = [1, 96], strides = [1, 1]} : vector<2x96xf32> to vector<1x96xf32>
    %71 = vector.extract_strided_slice %69 {offsets = [1, 0], sizes = [1, 96], strides = [1, 1]} : vector<2x96xf32> to vector<1x96xf32>
    %72 = arith.addf %71, %5 : vector<1x96xf32>
    %73 = vector.broadcast %68 : vector<8x1xf32> to vector<8x96xf32>
    %74 = vector.broadcast %70 : vector<1x96xf32> to vector<8x96xf32>
    %75 = arith.mulf %73, %74 : vector<8x96xf32>
    %76 = vector.broadcast %72 : vector<1x96xf32> to vector<8x96xf32>
    %77 = arith.addf %75, %76 : vector<8x96xf32>
    %78 = vector.extract_strided_slice %77 {offsets = [0, 0], sizes = [8, 32], strides = [1, 1]} : vector<8x96xf32> to vector<8x32xf32>
    %79 = vector.extract_strided_slice %77 {offsets = [0, 32], sizes = [8, 32], strides = [1, 1]} : vector<8x96xf32> to vector<8x32xf32>
    %80 = vector.extract_strided_slice %77 {offsets = [0, 64], sizes = [8, 32], strides = [1, 1]} : vector<8x96xf32> to vector<8x32xf32>
    %cst_18 = arith.constant 0.000000e+00 : f32
    %81 = vector.broadcast %cst_18 : f32 to vector<1x32xf32>
    %82 = vector.extract_strided_slice %78 {offsets = [0, 0], sizes = [1, 32], strides = [1, 1]} : vector<8x32xf32> to vector<1x32xf32>
    %83 = vector.extract_strided_slice %79 {offsets = [0, 0], sizes = [1, 32], strides = [1, 1]} : vector<8x32xf32> to vector<1x32xf32>
    %84 = vector.extract_strided_slice %80 {offsets = [0, 0], sizes = [1, 32], strides = [1, 1]} : vector<8x32xf32> to vector<1x32xf32>
    %cst_19 = arith.constant dense<0.000000e+00> : vector<1x96xf32>
    %85 = tpu.matmul %81, %1, %cst_19 {dimension_numbers = #tpu.dot_dimension_numbers<[1], [0], [0], [1], [0, 0, 1, 1], [], []>} : vector<1x32xf32>, vector<32x96xf32>, vector<1x96xf32> -> vector<1x96xf32>
    %86 = arith.addf %85, %6 : vector<1x96xf32>
    %87 = vector.extract_strided_slice %86 {offsets = [0, 0], sizes = [1, 32], strides = [1, 1]} : vector<1x96xf32> to vector<1x32xf32>
    %88 = arith.addf %82, %87 : vector<1x32xf32>
    %cst_20 = arith.constant 0.000000e+00 : f32
    %89 = vector.broadcast %cst_20 : f32 to vector<1x32xf32>
    %90 = arith.subf %89, %88 : vector<1x32xf32>
    %91 = math.exp %90 : vector<1x32xf32>
    %cst_21 = arith.constant 1.000000e+00 : f32
    %92 = vector.broadcast %cst_21 : f32 to vector<1x32xf32>
    %93 = arith.addf %92, %91 : vector<1x32xf32>
    %cst_22 = arith.constant 1.000000e+00 : f32
    %94 = vector.broadcast %cst_22 : f32 to vector<1x32xf32>
    %95 = arith.divf %94, %93 : vector<1x32xf32>
    %96 = vector.extract_strided_slice %86 {offsets = [0, 32], sizes = [1, 32], strides = [1, 1]} : vector<1x96xf32> to vector<1x32xf32>
    %97 = arith.addf %83, %96 : vector<1x32xf32>
    %cst_23 = arith.constant 0.000000e+00 : f32
    %98 = vector.broadcast %cst_23 : f32 to vector<1x32xf32>
    %99 = arith.subf %98, %97 : vector<1x32xf32>
    %100 = math.exp %99 : vector<1x32xf32>
    %cst_24 = arith.constant 1.000000e+00 : f32
    %101 = vector.broadcast %cst_24 : f32 to vector<1x32xf32>
    %102 = arith.addf %101, %100 : vector<1x32xf32>
    %cst_25 = arith.constant 1.000000e+00 : f32
    %103 = vector.broadcast %cst_25 : f32 to vector<1x32xf32>
    %104 = arith.divf %103, %102 : vector<1x32xf32>
    %105 = vector.extract_strided_slice %86 {offsets = [0, 64], sizes = [1, 32], strides = [1, 1]} : vector<1x96xf32> to vector<1x32xf32>
    %106 = arith.mulf %95, %105 : vector<1x32xf32>
    %107 = arith.addf %84, %106 : vector<1x32xf32>
    %108 = math.tanh %107 : vector<1x32xf32>
    %cst_26 = arith.constant 1.000000e+00 : f32
    %109 = vector.broadcast %cst_26 : f32 to vector<1x32xf32>
    %110 = arith.subf %109, %104 : vector<1x32xf32>
    %111 = arith.mulf %110, %108 : vector<1x32xf32>
    %112 = arith.mulf %104, %81 : vector<1x32xf32>
    %113 = arith.addf %111, %112 : vector<1x32xf32>
    %114 = vector.extract_strided_slice %78 {offsets = [1, 0], sizes = [1, 32], strides = [1, 1]} : vector<8x32xf32> to vector<1x32xf32>
    %115 = vector.extract_strided_slice %79 {offsets = [1, 0], sizes = [1, 32], strides = [1, 1]} : vector<8x32xf32> to vector<1x32xf32>
    %116 = vector.extract_strided_slice %80 {offsets = [1, 0], sizes = [1, 32], strides = [1, 1]} : vector<8x32xf32> to vector<1x32xf32>
    %cst_27 = arith.constant dense<0.000000e+00> : vector<1x96xf32>
    %117 = tpu.matmul %113, %1, %cst_27 {dimension_numbers = #tpu.dot_dimension_numbers<[1], [0], [0], [1], [0, 0, 1, 1], [], []>} : vector<1x32xf32>, vector<32x96xf32>, vector<1x96xf32> -> vector<1x96xf32>
    %118 = arith.addf %117, %6 : vector<1x96xf32>
    %119 = vector.extract_strided_slice %118 {offsets = [0, 0], sizes = [1, 32], strides = [1, 1]} : vector<1x96xf32> to vector<1x32xf32>
    %120 = arith.addf %114, %119 : vector<1x32xf32>
    %cst_28 = arith.constant 0.000000e+00 : f32
    %121 = vector.broadcast %cst_28 : f32 to vector<1x32xf32>
    %122 = arith.subf %121, %120 : vector<1x32xf32>
    %123 = math.exp %122 : vector<1x32xf32>
    %cst_29 = arith.constant 1.000000e+00 : f32
    %124 = vector.broadcast %cst_29 : f32 to vector<1x32xf32>
    %125 = arith.addf %124, %123 : vector<1x32xf32>
    %cst_30 = arith.constant 1.000000e+00 : f32
    %126 = vector.broadcast %cst_30 : f32 to vector<1x32xf32>
    %127 = arith.divf %126, %125 : vector<1x32xf32>
    %128 = vector.extract_strided_slice %118 {offsets = [0, 32], sizes = [1, 32], strides = [1, 1]} : vector<1x96xf32> to vector<1x32xf32>
    %129 = arith.addf %115, %128 : vector<1x32xf32>
    %cst_31 = arith.constant 0.000000e+00 : f32
    %130 = vector.broadcast %cst_31 : f32 to vector<1x32xf32>
    %131 = arith.subf %130, %129 : vector<1x32xf32>
    %132 = math.exp %131 : vector<1x32xf32>
    %cst_32 = arith.constant 1.000000e+00 : f32
    %133 = vector.broadcast %cst_32 : f32 to vector<1x32xf32>
    %134 = arith.addf %133, %132 : vector<1x32xf32>
    %cst_33 = arith.constant 1.000000e+00 : f32
    %135 = vector.broadcast %cst_33 : f32 to vector<1x32xf32>
    %136 = arith.divf %135, %134 : vector<1x32xf32>
    %137 = vector.extract_strided_slice %118 {offsets = [0, 64], sizes = [1, 32], strides = [1, 1]} : vector<1x96xf32> to vector<1x32xf32>
    %138 = arith.mulf %127, %137 : vector<1x32xf32>
    %139 = arith.addf %116, %138 : vector<1x32xf32>
    %140 = math.tanh %139 : vector<1x32xf32>
    %cst_34 = arith.constant 1.000000e+00 : f32
    %141 = vector.broadcast %cst_34 : f32 to vector<1x32xf32>
    %142 = arith.subf %141, %136 : vector<1x32xf32>
    %143 = arith.mulf %142, %140 : vector<1x32xf32>
    %144 = arith.mulf %136, %113 : vector<1x32xf32>
    %145 = arith.addf %143, %144 : vector<1x32xf32>
    %146 = vector.extract_strided_slice %78 {offsets = [2, 0], sizes = [1, 32], strides = [1, 1]} : vector<8x32xf32> to vector<1x32xf32>
    %147 = vector.extract_strided_slice %79 {offsets = [2, 0], sizes = [1, 32], strides = [1, 1]} : vector<8x32xf32> to vector<1x32xf32>
    %148 = vector.extract_strided_slice %80 {offsets = [2, 0], sizes = [1, 32], strides = [1, 1]} : vector<8x32xf32> to vector<1x32xf32>
    %cst_35 = arith.constant dense<0.000000e+00> : vector<1x96xf32>
    %149 = tpu.matmul %145, %1, %cst_35 {dimension_numbers = #tpu.dot_dimension_numbers<[1], [0], [0], [1], [0, 0, 1, 1], [], []>} : vector<1x32xf32>, vector<32x96xf32>, vector<1x96xf32> -> vector<1x96xf32>
    %150 = arith.addf %149, %6 : vector<1x96xf32>
    %151 = vector.extract_strided_slice %150 {offsets = [0, 0], sizes = [1, 32], strides = [1, 1]} : vector<1x96xf32> to vector<1x32xf32>
    %152 = arith.addf %146, %151 : vector<1x32xf32>
    %cst_36 = arith.constant 0.000000e+00 : f32
    %153 = vector.broadcast %cst_36 : f32 to vector<1x32xf32>
    %154 = arith.subf %153, %152 : vector<1x32xf32>
    %155 = math.exp %154 : vector<1x32xf32>
    %cst_37 = arith.constant 1.000000e+00 : f32
    %156 = vector.broadcast %cst_37 : f32 to vector<1x32xf32>
    %157 = arith.addf %156, %155 : vector<1x32xf32>
    %cst_38 = arith.constant 1.000000e+00 : f32
    %158 = vector.broadcast %cst_38 : f32 to vector<1x32xf32>
    %159 = arith.divf %158, %157 : vector<1x32xf32>
    %160 = vector.extract_strided_slice %150 {offsets = [0, 32], sizes = [1, 32], strides = [1, 1]} : vector<1x96xf32> to vector<1x32xf32>
    %161 = arith.addf %147, %160 : vector<1x32xf32>
    %cst_39 = arith.constant 0.000000e+00 : f32
    %162 = vector.broadcast %cst_39 : f32 to vector<1x32xf32>
    %163 = arith.subf %162, %161 : vector<1x32xf32>
    %164 = math.exp %163 : vector<1x32xf32>
    %cst_40 = arith.constant 1.000000e+00 : f32
    %165 = vector.broadcast %cst_40 : f32 to vector<1x32xf32>
    %166 = arith.addf %165, %164 : vector<1x32xf32>
    %cst_41 = arith.constant 1.000000e+00 : f32
    %167 = vector.broadcast %cst_41 : f32 to vector<1x32xf32>
    %168 = arith.divf %167, %166 : vector<1x32xf32>
    %169 = vector.extract_strided_slice %150 {offsets = [0, 64], sizes = [1, 32], strides = [1, 1]} : vector<1x96xf32> to vector<1x32xf32>
    %170 = arith.mulf %159, %169 : vector<1x32xf32>
    %171 = arith.addf %148, %170 : vector<1x32xf32>
    %172 = math.tanh %171 : vector<1x32xf32>
    %cst_42 = arith.constant 1.000000e+00 : f32
    %173 = vector.broadcast %cst_42 : f32 to vector<1x32xf32>
    %174 = arith.subf %173, %168 : vector<1x32xf32>
    %175 = arith.mulf %174, %172 : vector<1x32xf32>
    %176 = arith.mulf %168, %145 : vector<1x32xf32>
    %177 = arith.addf %175, %176 : vector<1x32xf32>
    %178 = vector.extract_strided_slice %78 {offsets = [3, 0], sizes = [1, 32], strides = [1, 1]} : vector<8x32xf32> to vector<1x32xf32>
    %179 = vector.extract_strided_slice %79 {offsets = [3, 0], sizes = [1, 32], strides = [1, 1]} : vector<8x32xf32> to vector<1x32xf32>
    %180 = vector.extract_strided_slice %80 {offsets = [3, 0], sizes = [1, 32], strides = [1, 1]} : vector<8x32xf32> to vector<1x32xf32>
    %cst_43 = arith.constant dense<0.000000e+00> : vector<1x96xf32>
    %181 = tpu.matmul %177, %1, %cst_43 {dimension_numbers = #tpu.dot_dimension_numbers<[1], [0], [0], [1], [0, 0, 1, 1], [], []>} : vector<1x32xf32>, vector<32x96xf32>, vector<1x96xf32> -> vector<1x96xf32>
    %182 = arith.addf %181, %6 : vector<1x96xf32>
    %183 = vector.extract_strided_slice %182 {offsets = [0, 0], sizes = [1, 32], strides = [1, 1]} : vector<1x96xf32> to vector<1x32xf32>
    %184 = arith.addf %178, %183 : vector<1x32xf32>
    %cst_44 = arith.constant 0.000000e+00 : f32
    %185 = vector.broadcast %cst_44 : f32 to vector<1x32xf32>
    %186 = arith.subf %185, %184 : vector<1x32xf32>
    %187 = math.exp %186 : vector<1x32xf32>
    %cst_45 = arith.constant 1.000000e+00 : f32
    %188 = vector.broadcast %cst_45 : f32 to vector<1x32xf32>
    %189 = arith.addf %188, %187 : vector<1x32xf32>
    %cst_46 = arith.constant 1.000000e+00 : f32
    %190 = vector.broadcast %cst_46 : f32 to vector<1x32xf32>
    %191 = arith.divf %190, %189 : vector<1x32xf32>
    %192 = vector.extract_strided_slice %182 {offsets = [0, 32], sizes = [1, 32], strides = [1, 1]} : vector<1x96xf32> to vector<1x32xf32>
    %193 = arith.addf %179, %192 : vector<1x32xf32>
    %cst_47 = arith.constant 0.000000e+00 : f32
    %194 = vector.broadcast %cst_47 : f32 to vector<1x32xf32>
    %195 = arith.subf %194, %193 : vector<1x32xf32>
    %196 = math.exp %195 : vector<1x32xf32>
    %cst_48 = arith.constant 1.000000e+00 : f32
    %197 = vector.broadcast %cst_48 : f32 to vector<1x32xf32>
    %198 = arith.addf %197, %196 : vector<1x32xf32>
    %cst_49 = arith.constant 1.000000e+00 : f32
    %199 = vector.broadcast %cst_49 : f32 to vector<1x32xf32>
    %200 = arith.divf %199, %198 : vector<1x32xf32>
    %201 = vector.extract_strided_slice %182 {offsets = [0, 64], sizes = [1, 32], strides = [1, 1]} : vector<1x96xf32> to vector<1x32xf32>
    %202 = arith.mulf %191, %201 : vector<1x32xf32>
    %203 = arith.addf %180, %202 : vector<1x32xf32>
    %204 = math.tanh %203 : vector<1x32xf32>
    %cst_50 = arith.constant 1.000000e+00 : f32
    %205 = vector.broadcast %cst_50 : f32 to vector<1x32xf32>
    %206 = arith.subf %205, %200 : vector<1x32xf32>
    %207 = arith.mulf %206, %204 : vector<1x32xf32>
    %208 = arith.mulf %200, %177 : vector<1x32xf32>
    %209 = arith.addf %207, %208 : vector<1x32xf32>
    %210 = vector.extract_strided_slice %78 {offsets = [4, 0], sizes = [1, 32], strides = [1, 1]} : vector<8x32xf32> to vector<1x32xf32>
    %211 = vector.extract_strided_slice %79 {offsets = [4, 0], sizes = [1, 32], strides = [1, 1]} : vector<8x32xf32> to vector<1x32xf32>
    %212 = vector.extract_strided_slice %80 {offsets = [4, 0], sizes = [1, 32], strides = [1, 1]} : vector<8x32xf32> to vector<1x32xf32>
    %cst_51 = arith.constant dense<0.000000e+00> : vector<1x96xf32>
    %213 = tpu.matmul %209, %1, %cst_51 {dimension_numbers = #tpu.dot_dimension_numbers<[1], [0], [0], [1], [0, 0, 1, 1], [], []>} : vector<1x32xf32>, vector<32x96xf32>, vector<1x96xf32> -> vector<1x96xf32>
    %214 = arith.addf %213, %6 : vector<1x96xf32>
    %215 = vector.extract_strided_slice %214 {offsets = [0, 0], sizes = [1, 32], strides = [1, 1]} : vector<1x96xf32> to vector<1x32xf32>
    %216 = arith.addf %210, %215 : vector<1x32xf32>
    %cst_52 = arith.constant 0.000000e+00 : f32
    %217 = vector.broadcast %cst_52 : f32 to vector<1x32xf32>
    %218 = arith.subf %217, %216 : vector<1x32xf32>
    %219 = math.exp %218 : vector<1x32xf32>
    %cst_53 = arith.constant 1.000000e+00 : f32
    %220 = vector.broadcast %cst_53 : f32 to vector<1x32xf32>
    %221 = arith.addf %220, %219 : vector<1x32xf32>
    %cst_54 = arith.constant 1.000000e+00 : f32
    %222 = vector.broadcast %cst_54 : f32 to vector<1x32xf32>
    %223 = arith.divf %222, %221 : vector<1x32xf32>
    %224 = vector.extract_strided_slice %214 {offsets = [0, 32], sizes = [1, 32], strides = [1, 1]} : vector<1x96xf32> to vector<1x32xf32>
    %225 = arith.addf %211, %224 : vector<1x32xf32>
    %cst_55 = arith.constant 0.000000e+00 : f32
    %226 = vector.broadcast %cst_55 : f32 to vector<1x32xf32>
    %227 = arith.subf %226, %225 : vector<1x32xf32>
    %228 = math.exp %227 : vector<1x32xf32>
    %cst_56 = arith.constant 1.000000e+00 : f32
    %229 = vector.broadcast %cst_56 : f32 to vector<1x32xf32>
    %230 = arith.addf %229, %228 : vector<1x32xf32>
    %cst_57 = arith.constant 1.000000e+00 : f32
    %231 = vector.broadcast %cst_57 : f32 to vector<1x32xf32>
    %232 = arith.divf %231, %230 : vector<1x32xf32>
    %233 = vector.extract_strided_slice %214 {offsets = [0, 64], sizes = [1, 32], strides = [1, 1]} : vector<1x96xf32> to vector<1x32xf32>
    %234 = arith.mulf %223, %233 : vector<1x32xf32>
    %235 = arith.addf %212, %234 : vector<1x32xf32>
    %236 = math.tanh %235 : vector<1x32xf32>
    %cst_58 = arith.constant 1.000000e+00 : f32
    %237 = vector.broadcast %cst_58 : f32 to vector<1x32xf32>
    %238 = arith.subf %237, %232 : vector<1x32xf32>
    %239 = arith.mulf %238, %236 : vector<1x32xf32>
    %240 = arith.mulf %232, %209 : vector<1x32xf32>
    %241 = arith.addf %239, %240 : vector<1x32xf32>
    %242 = vector.extract_strided_slice %78 {offsets = [5, 0], sizes = [1, 32], strides = [1, 1]} : vector<8x32xf32> to vector<1x32xf32>
    %243 = vector.extract_strided_slice %79 {offsets = [5, 0], sizes = [1, 32], strides = [1, 1]} : vector<8x32xf32> to vector<1x32xf32>
    %244 = vector.extract_strided_slice %80 {offsets = [5, 0], sizes = [1, 32], strides = [1, 1]} : vector<8x32xf32> to vector<1x32xf32>
    %cst_59 = arith.constant dense<0.000000e+00> : vector<1x96xf32>
    %245 = tpu.matmul %241, %1, %cst_59 {dimension_numbers = #tpu.dot_dimension_numbers<[1], [0], [0], [1], [0, 0, 1, 1], [], []>} : vector<1x32xf32>, vector<32x96xf32>, vector<1x96xf32> -> vector<1x96xf32>
    %246 = arith.addf %245, %6 : vector<1x96xf32>
    %247 = vector.extract_strided_slice %246 {offsets = [0, 0], sizes = [1, 32], strides = [1, 1]} : vector<1x96xf32> to vector<1x32xf32>
    %248 = arith.addf %242, %247 : vector<1x32xf32>
    %cst_60 = arith.constant 0.000000e+00 : f32
    %249 = vector.broadcast %cst_60 : f32 to vector<1x32xf32>
    %250 = arith.subf %249, %248 : vector<1x32xf32>
    %251 = math.exp %250 : vector<1x32xf32>
    %cst_61 = arith.constant 1.000000e+00 : f32
    %252 = vector.broadcast %cst_61 : f32 to vector<1x32xf32>
    %253 = arith.addf %252, %251 : vector<1x32xf32>
    %cst_62 = arith.constant 1.000000e+00 : f32
    %254 = vector.broadcast %cst_62 : f32 to vector<1x32xf32>
    %255 = arith.divf %254, %253 : vector<1x32xf32>
    %256 = vector.extract_strided_slice %246 {offsets = [0, 32], sizes = [1, 32], strides = [1, 1]} : vector<1x96xf32> to vector<1x32xf32>
    %257 = arith.addf %243, %256 : vector<1x32xf32>
    %cst_63 = arith.constant 0.000000e+00 : f32
    %258 = vector.broadcast %cst_63 : f32 to vector<1x32xf32>
    %259 = arith.subf %258, %257 : vector<1x32xf32>
    %260 = math.exp %259 : vector<1x32xf32>
    %cst_64 = arith.constant 1.000000e+00 : f32
    %261 = vector.broadcast %cst_64 : f32 to vector<1x32xf32>
    %262 = arith.addf %261, %260 : vector<1x32xf32>
    %cst_65 = arith.constant 1.000000e+00 : f32
    %263 = vector.broadcast %cst_65 : f32 to vector<1x32xf32>
    %264 = arith.divf %263, %262 : vector<1x32xf32>
    %265 = vector.extract_strided_slice %246 {offsets = [0, 64], sizes = [1, 32], strides = [1, 1]} : vector<1x96xf32> to vector<1x32xf32>
    %266 = arith.mulf %255, %265 : vector<1x32xf32>
    %267 = arith.addf %244, %266 : vector<1x32xf32>
    %268 = math.tanh %267 : vector<1x32xf32>
    %cst_66 = arith.constant 1.000000e+00 : f32
    %269 = vector.broadcast %cst_66 : f32 to vector<1x32xf32>
    %270 = arith.subf %269, %264 : vector<1x32xf32>
    %271 = arith.mulf %270, %268 : vector<1x32xf32>
    %272 = arith.mulf %264, %241 : vector<1x32xf32>
    %273 = arith.addf %271, %272 : vector<1x32xf32>
    %274 = vector.extract_strided_slice %78 {offsets = [6, 0], sizes = [1, 32], strides = [1, 1]} : vector<8x32xf32> to vector<1x32xf32>
    %275 = vector.extract_strided_slice %79 {offsets = [6, 0], sizes = [1, 32], strides = [1, 1]} : vector<8x32xf32> to vector<1x32xf32>
    %276 = vector.extract_strided_slice %80 {offsets = [6, 0], sizes = [1, 32], strides = [1, 1]} : vector<8x32xf32> to vector<1x32xf32>
    %cst_67 = arith.constant dense<0.000000e+00> : vector<1x96xf32>
    %277 = tpu.matmul %273, %1, %cst_67 {dimension_numbers = #tpu.dot_dimension_numbers<[1], [0], [0], [1], [0, 0, 1, 1], [], []>} : vector<1x32xf32>, vector<32x96xf32>, vector<1x96xf32> -> vector<1x96xf32>
    %278 = arith.addf %277, %6 : vector<1x96xf32>
    %279 = vector.extract_strided_slice %278 {offsets = [0, 0], sizes = [1, 32], strides = [1, 1]} : vector<1x96xf32> to vector<1x32xf32>
    %280 = arith.addf %274, %279 : vector<1x32xf32>
    %cst_68 = arith.constant 0.000000e+00 : f32
    %281 = vector.broadcast %cst_68 : f32 to vector<1x32xf32>
    %282 = arith.subf %281, %280 : vector<1x32xf32>
    %283 = math.exp %282 : vector<1x32xf32>
    %cst_69 = arith.constant 1.000000e+00 : f32
    %284 = vector.broadcast %cst_69 : f32 to vector<1x32xf32>
    %285 = arith.addf %284, %283 : vector<1x32xf32>
    %cst_70 = arith.constant 1.000000e+00 : f32
    %286 = vector.broadcast %cst_70 : f32 to vector<1x32xf32>
    %287 = arith.divf %286, %285 : vector<1x32xf32>
    %288 = vector.extract_strided_slice %278 {offsets = [0, 32], sizes = [1, 32], strides = [1, 1]} : vector<1x96xf32> to vector<1x32xf32>
    %289 = arith.addf %275, %288 : vector<1x32xf32>
    %cst_71 = arith.constant 0.000000e+00 : f32
    %290 = vector.broadcast %cst_71 : f32 to vector<1x32xf32>
    %291 = arith.subf %290, %289 : vector<1x32xf32>
    %292 = math.exp %291 : vector<1x32xf32>
    %cst_72 = arith.constant 1.000000e+00 : f32
    %293 = vector.broadcast %cst_72 : f32 to vector<1x32xf32>
    %294 = arith.addf %293, %292 : vector<1x32xf32>
    %cst_73 = arith.constant 1.000000e+00 : f32
    %295 = vector.broadcast %cst_73 : f32 to vector<1x32xf32>
    %296 = arith.divf %295, %294 : vector<1x32xf32>
    %297 = vector.extract_strided_slice %278 {offsets = [0, 64], sizes = [1, 32], strides = [1, 1]} : vector<1x96xf32> to vector<1x32xf32>
    %298 = arith.mulf %287, %297 : vector<1x32xf32>
    %299 = arith.addf %276, %298 : vector<1x32xf32>
    %300 = math.tanh %299 : vector<1x32xf32>
    %cst_74 = arith.constant 1.000000e+00 : f32
    %301 = vector.broadcast %cst_74 : f32 to vector<1x32xf32>
    %302 = arith.subf %301, %296 : vector<1x32xf32>
    %303 = arith.mulf %302, %300 : vector<1x32xf32>
    %304 = arith.mulf %296, %273 : vector<1x32xf32>
    %305 = arith.addf %303, %304 : vector<1x32xf32>
    %306 = vector.extract_strided_slice %78 {offsets = [7, 0], sizes = [1, 32], strides = [1, 1]} : vector<8x32xf32> to vector<1x32xf32>
    %307 = vector.extract_strided_slice %79 {offsets = [7, 0], sizes = [1, 32], strides = [1, 1]} : vector<8x32xf32> to vector<1x32xf32>
    %308 = vector.extract_strided_slice %80 {offsets = [7, 0], sizes = [1, 32], strides = [1, 1]} : vector<8x32xf32> to vector<1x32xf32>
    %cst_75 = arith.constant dense<0.000000e+00> : vector<1x96xf32>
    %309 = tpu.matmul %305, %1, %cst_75 {dimension_numbers = #tpu.dot_dimension_numbers<[1], [0], [0], [1], [0, 0, 1, 1], [], []>} : vector<1x32xf32>, vector<32x96xf32>, vector<1x96xf32> -> vector<1x96xf32>
    %310 = arith.addf %309, %6 : vector<1x96xf32>
    %311 = vector.extract_strided_slice %310 {offsets = [0, 0], sizes = [1, 32], strides = [1, 1]} : vector<1x96xf32> to vector<1x32xf32>
    %312 = arith.addf %306, %311 : vector<1x32xf32>
    %cst_76 = arith.constant 0.000000e+00 : f32
    %313 = vector.broadcast %cst_76 : f32 to vector<1x32xf32>
    %314 = arith.subf %313, %312 : vector<1x32xf32>
    %315 = math.exp %314 : vector<1x32xf32>
    %cst_77 = arith.constant 1.000000e+00 : f32
    %316 = vector.broadcast %cst_77 : f32 to vector<1x32xf32>
    %317 = arith.addf %316, %315 : vector<1x32xf32>
    %cst_78 = arith.constant 1.000000e+00 : f32
    %318 = vector.broadcast %cst_78 : f32 to vector<1x32xf32>
    %319 = arith.divf %318, %317 : vector<1x32xf32>
    %320 = vector.extract_strided_slice %310 {offsets = [0, 32], sizes = [1, 32], strides = [1, 1]} : vector<1x96xf32> to vector<1x32xf32>
    %321 = arith.addf %307, %320 : vector<1x32xf32>
    %cst_79 = arith.constant 0.000000e+00 : f32
    %322 = vector.broadcast %cst_79 : f32 to vector<1x32xf32>
    %323 = arith.subf %322, %321 : vector<1x32xf32>
    %324 = math.exp %323 : vector<1x32xf32>
    %cst_80 = arith.constant 1.000000e+00 : f32
    %325 = vector.broadcast %cst_80 : f32 to vector<1x32xf32>
    %326 = arith.addf %325, %324 : vector<1x32xf32>
    %cst_81 = arith.constant 1.000000e+00 : f32
    %327 = vector.broadcast %cst_81 : f32 to vector<1x32xf32>
    %328 = arith.divf %327, %326 : vector<1x32xf32>
    %329 = vector.extract_strided_slice %310 {offsets = [0, 64], sizes = [1, 32], strides = [1, 1]} : vector<1x96xf32> to vector<1x32xf32>
    %330 = arith.mulf %319, %329 : vector<1x32xf32>
    %331 = arith.addf %308, %330 : vector<1x32xf32>
    %332 = math.tanh %331 : vector<1x32xf32>
    %cst_82 = arith.constant 1.000000e+00 : f32
    %333 = vector.broadcast %cst_82 : f32 to vector<1x32xf32>
    %334 = arith.subf %333, %328 : vector<1x32xf32>
    %335 = arith.mulf %334, %332 : vector<1x32xf32>
    %336 = arith.mulf %328, %305 : vector<1x32xf32>
    %337 = arith.addf %335, %336 : vector<1x32xf32>
    %cst_83 = arith.constant dense<0.000000e+00> : vector<1x16xf32>
    %338 = tpu.matmul %337, %3, %cst_83 {dimension_numbers = #tpu.dot_dimension_numbers<[1], [0], [0], [1], [0, 0, 1, 1], [], []>} : vector<1x32xf32>, vector<32x16xf32>, vector<1x16xf32> -> vector<1x16xf32>
    %339 = arith.addf %338, %9 : vector<1x16xf32>
    %cst_84 = arith.constant 0.000000e+00 : f32
    %340 = vector.broadcast %cst_84 : f32 to vector<1x16xf32>
    %341 = arith.maximumf %339, %340 : vector<1x16xf32>
    %342 = arith.mulf %341, %10 : vector<1x16xf32>
    %cst_85 = arith.constant dense<0.000000e+00> : vector<1xf32>
    %343 = vector.multi_reduction <add>, %342, %cst_85 [1] : vector<1x16xf32> to vector<1xf32>
    %344 = vector.shape_cast %343 : vector<1xf32> to vector<1x1xf32>
    %345 = arith.addf %344, %11 : vector<1x1xf32>
    %c0_86 = arith.constant 0 : index
    %c0_87 = arith.constant 0 : index
    %346 = vector.load %arg2[%c0_86, %c0_87] : memref<1x1xf32, #tpu.memory_space<vmem>>, vector<1x1xf32>
    tpu.vector_store %arg2[%c0_86, %c0_87], %345 {strides = array<i32>} : memref<1x1xf32, #tpu.memory_space<vmem>>, vector<1x1xf32>,
    return
  }
}

</mosaic_0001>

<bundles_post_ra>
// kernel: rnn_coeff_forward.1
= control target key start
LH: loop header
LB: loop body
LE: loop exit
PB: predicated region body
PF: predicated region fallthrough
CT: control target
= control target key end

     0   :  { %vm30_vm0 = vcmask 7168   ;;  %s1706_s0 = inlined_call_operand.vmem [shape: f32[8,1], index: 0, kind: input, shape index: {}]   ;;  %s1707_s1 = inlined_call_operand.vmem [shape: f32[101,96], index: 1, kind: input, shape index: {}]   ;;  %s1708_s2 = inlined_call_operand.hbm [shape: f32[1,1], index: 2, kind: output, shape index: {}]  }
   0x1   :  { %v1499_v0 = vld [vmem:[%s1706_s0] sm:$0xff] }
   0x2   :  { %7 = vsyncpa [#allocation4], 0  ;;  %v61_v1 = vsel %vm30_vm0, %v1499_v0, 0.0  ;;  %v26_v2 = vand.u32 2147483647, %v1499_v0  ;;  %v1473_v3 = vmov 0.0  }
   0x3   :  { %62 = vadd.xlane.f32.xlu1 %v61_v1  ;;  %v16_v7 = vld [vmem:[%s1707_s1 + $0x20] sm:$0xff]  ;;  %v17_v8 = vld [vmem:[%s1707_s1 + $0x28] sm:$0xff]  ;;  %v18_v9 = vld [vmem:[%s1707_s1 + $0x30] sm:$0xff]  ;;  %v1474_v10 = vmov 0.0|0.0   ;;  %vm1475_vm2 = vmmov 0   ;;  %vm108_vm3 = vcmask 261120  }
   0x4   :  { %vm27_vm1 = vcmp.gt.f32.partialorder %v26_v2, 1e-08  ;;  %v43_v6 = vsel %vm30_vm0, %v26_v2, -inf  ;;  %1324 = vmatprep.subr.bf16.mxu1 %v1474_v10  ;;  %v1517_v11 = vpack.c.bf16 %v17_v8, %v16_v7  ;;  %v19_v12 = vld [vmem:[%s1707_s1 + $0x38] sm:$0xff]  ;;  %1227 = vmatprep.mubr.msk.f32.mxu1 %vm1475_vm2, %v1473_v3  ;;  %v12_v40 = vld [vmem:[%s1707_s1] sm:$0xff]  ;;  %v13_v41 = vld [vmem:[%s1707_s1 + $0x8] sm:$0xff] }
   0x5   :  { %v1148_v4 = vsel %vm27_vm1, 1.0, %v1473_v3  ;;  %1318 = vmatprep.subr.bf16.mxu0 %v1474_v10  ;;  %1216 = vmatprep.mubr.msk.f32.mxu0 %vm1475_vm2, %v1473_v3  ;;  %v1528_v13 = vpack.c.bf16 %v19_v12, %v18_v9  ;;  %v1319_v42 = vpack.c.bf16 %v13_v41, %v12_v40  ;;  %v14_v43 = vld [vmem:[%s1707_s1 + $0x10] sm:$0xff]  ;;  %v15_v44 = vld [vmem:[%s1707_s1 + $0x18] sm:$0xff]  ;;  %v1562_v45 = vld [vmem:[%s1707_s1 + $0x60] sm:$0x1f]  ;;  %v1476_v48 = vmov 0  }
   0x6   :  { %v31_v5 = vsel %vm30_vm0, %v1148_v4, 0.0  ;;  %1326 = vmatpush3.bf16.msra.mxu1 %v1517_v11  ;;  %v1322_v46 = vpack.c.bf16 %v15_v44, %v14_v43  ;;  %v107_v47 = vrot.slane %v1562_v45, 2  ;;  %1394 = vset.pattern.permute.xlu0 %v1476_v48  ;;  %v1574_v49 = vrot.slane %v1562_v45, 1  ;;  %s1477_s3 = smov 64   ;;  %s1478_s5 = smov 96  }
   0x7   :  { %32 = vadd.xlane.f32.xlu0 %v31_v5  ;;  %1327 = vmatprep.subr.bf16.mxu1 %v1474_v10  ;;  %s1479_s13 = smov 112   ;;  %vm1124_vm9 = vcmask 122880   ;;  %vm1132_vm10 = vcmask 0  }
   0x8   :  { %1320 = vmatpush3.bf16.msra.mxu0 %v1319_v42 }
   0x9   :  { %1321 = vmatprep.subr.bf16.mxu0 %v1474_v10 }
   0xa   :  { %1329 = vmatpush3.bf16.msra.mxu1 %v1528_v13 }
   0xb   :  { %44 = vmax.xlane.f32.xlu0 %v43_v6  ;;  %1336 = vmatprep.subr.bf16.mxu1 %v1474_v10 }
   0xc   :  { %1323 = vmatpush3.bf16.msra.mxu0 %v1322_v46 }
   0xd   :  { %1228 = vmatmul.mubr.f32.vlgmr.msra.gmra.mrb[0].mxu1 %v1473_v3  ;;  %1330 = vmatprep.subr.bf16.mxu0 %v1474_v10 }
   0xe   :  { %1338 = vmatpush3.bf16.msra.mxu1 %v1517_v11  ;;  %1249 = vmatprep.mubr.msk.f32.mxu1 %vm1475_vm2, %v1473_v3 }
   0xf   :  { %1339 = vmatprep.subr.bf16.mxu1 %v1474_v10  ;;  %1217 = vmatmul.mubr.msk.f32.vlgmr.msra.gmra.mrb[0].mxu0 %vm108_vm3, %v107_v47 }
  0x10   :  { %1332 = vmatpush3.bf16.msra.mxu0 %v1517_v11  ;;  %1238 = vmatprep.mubr.msk.f32.mxu0 %vm1475_vm2, %v1473_v3 }
  0x11   :  { %1333 = vmatprep.subr.bf16.mxu0 %v1474_v10 }
  0x12   :  { %1341 = vmatpush3.bf16.msra.mxu1 %v1528_v13 }
  0x13   :  { %1348 = vmatprep.subr.bf16.mxu1 %v1474_v10 }
  0x14   :  { %1335 = vmatpush3.bf16.msra.mxu0 %v1528_v13 }
  0x15   :  { %1342 = vmatprep.subr.bf16.mxu0 %v1474_v10 }
  0x90   :  { %v63_v14 = vpop.xlane.xlu1 %62 }
  0x91   :  { %v64_v15 = vrot.slane %v63_v14, 4 }
  0x93   :  { %v65_v16 = vadd.f32 %v64_v15, %v63_v14 }
  0x94   :  { %v33_v17 = vpop.xlane.xlu0 %32 }
  0x95   :  { %v34_v18 = vrot.slane %v33_v17, 4  ;;  %v66_v20 = vrot.slane %v65_v16, 2 }
  0x97   :  { %v35_v19 = vadd.f32 %v34_v18, %v33_v17  ;;  %v67_v26 = vadd.f32 %v66_v20, %v65_v16 }
  0x98   :  { %v45_v21 = vpop.xlane.xlu0 %44 }
  0x99   :  { %v36_v22 = vrot.slane %v35_v19, 2  ;;  %v46_v23 = vrot.slane %v45_v21, 4  ;;  %v68_v31 = vrot.slane %v67_v26, 1 }
  0x9b   :  { %v47_v24 = vmax.f32 %v45_v21, %v46_v23  ;;  %v37_v25 = vadd.f32 %v36_v22, %v35_v19  ;;  %v69_v34 = vadd.f32 %v68_v31, %v67_v26  ;;  %v189_v21 = vlaneseq }
  0x9c   :  { %v181_v23 = vrot.slane %v1562_v45, 7 }
  0x9d   :  { %v48_v27 = vrot.slane %v47_v24, 2  ;;  %v38_v28 = vrot.slane %v37_v25, 1  ;;  %v190_v22 = vshrl.u32 %v189_v21, 7 }
  0x9f   :  { %v39_v29 = vadd.f32 %v38_v28, %v37_v25  ;;  %v49_v30 = vmax.f32 %v47_v24, %v48_v27  ;;  %v191_v24 = vsub.s32 0, %v190_v22  ;;  %v196_v26 = vsub.s32 1, %v190_v22 }
  0xa1   :  { %1378 = vpush %v39_v29  ;;  %v50_v32 = vrot.slane %v49_v30, 1 }
  0xa3   :  { %v51_v33 = vmax.f32 %v49_v30, %v50_v32 }
  0xa5   :  { %1380 = vpush %v51_v33 }
  0xa6   :  { %1382 = vpush %v69_v34 }
  0xd2   :  { %s1540_s18 = spop %1378 }
  0xd3   :  { %v41_v14 = vstv %s1540_s18 }
  0xd4   :  { %vm42_vm8 = vcmp.lt.f32.partialorder %v41_v14, 1.6 }
  0xd6   :  { %s1542_s19 = spop %1380 }
  0xd7   :  { %s1383_s20 = spop %1382  ;;  %v53_v62 = vstv %s1542_s19 }
  0xd8   :  { %v71_v35 = vstv %s1383_s20  ;;  %v55_v63 = vadd.f32 1e-08, %v53_v62  ;;  %vm54_vm6 = vcmp.gt.f32.partialorder %v53_v62, 1e-08 }
  0xd9   :  { %v73_v36 = vmul.f32 0.125, %v71_v35 }
  0xdb   :  { %v74_v37 = vsub.f32 %v1499_v0, %v73_v36 }
  0xdd   :  { %v75_v38 = vmul.f32 %v74_v37, %v74_v37 }
  0xdf   :  { %v76_v39 = vsel %vm30_vm0, %v75_v38, 0.0 }
  0xe0   :  { %77 = vadd.xlane.f32.xlu1 %v76_v39  ;;  %v270_v50 = vpop.f32.mrb[0].mxu1 }
  0xe1   :  { %v271_v51 = vadd.f32 %v270_v50, %v1574_v49  ;;  %v1229_v52 = vpop.f32.mrb[1].mxu1 }
  0xe2   :  { %v177_v16 = vpop.f32.mrb[0].mxu0 }
  0xe3   :  { %v1218_v17 = vpop.f32.mrb[1].mxu0  ;;  %v183_v25 = vadd.f32 %v181_v23, %v177_v16  ;;  %v192_v27 = vrot.slane %v177_v16, %v191_v24 }
  0xe5   :  { %v197_v28 = vrot.slane %v183_v25, %v196_v26 }
  0xf1   :  { %282 = vrot.lane.b32.xlu1 %v271_v51, %s1477_s3 }
 0x16d   :  { %v78_v53 = vpop.xlane.xlu1 %77 }
 0x16e   :  { %v79_v54 = vrot.slane %v78_v53, 4 }
 0x170   :  { %v80_v55 = vadd.f32 %v79_v54, %v78_v53 }
 0x171   :  { %v283_v36 = vpop.permute.xlu1 %282 }
 0x172   :  { %v81_v56 = vrot.slane %v80_v55, 2 }
 0x174   :  { %v82_v57 = vadd.f32 %v81_v56, %v80_v55 }
 0x176   :  { %v83_v58 = vrot.slane %v82_v57, 1 }
 0x178   :  { %v84_v59 = vadd.f32 %v83_v58, %v82_v57 }
 0x17a   :  { %1384 = vpush %v84_v59 }
 0x1ab   :  { %s1385_s4 = spop %1384 }
 0x1ac   :  { %v86_v60 = vstv %s1385_s4 }
 0x1ad   :  { %v88_v61 = vmul.f32 0.14285715, %v86_v60 }
 0x1af   :  { %1395 = vrsqrt.f32 %v88_v61  ;;  %vm91_vm4 = vcmp.eq.f32.partialorder %v88_v61, inf  ;;  %v94_v4 = vand.u32 2147483648, %v88_v61  ;;  %vm93_vm5 = vcmp.eq.f32.partialorder %v88_v61, 0.0 }
 0x1b0   :  { %1397 = vrcp.f32 %v55_v63 }
 0x1b9   :  { %v1396_v1 = vpop.eup %1395 }
 0x1ba   :  { %v90_v2 = vmul.f32 %v1396_v1, %v88_v61  ;;  %v1398_v8 = vpop.eup %1397 }
 0x1bb   :  { %v57_v9 = vmul.f32 %v1398_v8, %v1499_v0 }
 0x1bc   :  { %v92_v5 = vsel %vm91_vm4, %v88_v61, %v90_v2 }
 0x1bd   :  { %v95_v6 = vsel %vm93_vm5, %v94_v4, %v92_v5  ;;  %v60_v18 = vsel %vm54_vm6, %v57_v9, %v1499_v0 }
 0x1be   :  { %v97_v7 = vadd.f32 1e-08, %v95_v6  ;;  %vm96_vm7 = vcmp.gt.f32.partialorder %v95_v6, 1e-08 }
 0x1c0   :  { %1399 = vrcp.f32 %v97_v7 }
 0x1ca   :  { %v1400_v12 = vpop.eup %1399 }
 0x1cb   :  { %v99_v15 = vmul.f32 %v1400_v12, %v74_v37 }
 0x1cd   :  { %v102_v19 = vsel %vm96_vm7, %v99_v15, %v1499_v0 }
 0x1ce   :  { %v105_v20 = vsel %vm42_vm8, %v60_v18, %v102_v19 }
 0x1cf   :  { %186 = vperm.xlu0 %1394, %v105_v20  }
 0x24e   :  { %v187_v29 = vpop.permute.xlu0 %186 }
 0x24f   :  { %v193_v30 = vmul.f32 %v192_v27, %v187_v29 }
 0x251   :  { %v1584_v31 = vadd.f32 %v197_v28, %v193_v30 }
 0x253   :  { %v274_v32 = vadd.f32 %v271_v51, %v1584_v31 }
 0x255   :  { %v275_v33 = vsub.f32 0.0, %v274_v32 }
 0x257   :  { %v276_v34 = vmul.f32 1.442695, %v275_v33 }
 0x259   :  { %1401 = vpow2.f32 %v276_v34 }
 0x263   :  { %v1402_v0 = vpop.eup %1401 }
 0x264   :  { %v278_v35 = vadd.f32 1.0, %v1402_v0 }
 0x266   :  { %1403 = vrcp.f32 %v278_v35 }
 0x270   :  { %v1404_v37 = vpop.eup %1403 }
 0x271   :  { %v285_v38 = vmul.f32 %v1404_v37, %v283_v36  ;;  %v292_v42 = vsub.f32 1.0, %v1404_v37  ;;  %v298_v44 = vmul.f32 0.0, %v1404_v37 }
 0x273   :  { %287 = vrot.lane.b32.xlu1 %v285_v38, %s1477_s3 }
 0x2e5   :  { %v288_v39 = vpop.permute.xlu1 %287 }
 0x2e6   :  { %v290_v40 = vadd.f32 %v288_v39, %v1584_v31 }
 0x2e8   :  { %1405 = vtanh.f32 %v290_v40 }
 0x2f2   :  { %v1406_v41 = vpop.eup %1405 }
 0x2f3   :  { %294 = vrot.lane.b32.xlu1 %v1406_v41, %s1478_s5 }
 0x365   :  { %v295_v43 = vpop.permute.xlu1 %294 }
 0x366   :  { %v297_v46 = vmul.f32 %v295_v43, %v292_v42 }
 0x368   :  { %v299_v47 = vadd.f32 %v298_v44, %v297_v46 }
 0x36a   :  { %301 = vrot.lane.b32.xlu1 %v299_v47, %s1478_s5  ;;  %v401_v2 = vrot.slane %v299_v47, 7 }
 0x3dc   :  { %v302_v48 = vpop.permute.xlu1 %301 }
 0x3dd   :  { %1239 = vmatmul.mubr.msk.f32.vlgmr.msra.gmra.mrb[2].mxu0 %vm108_vm3, %v302_v48 }
 0x3de   :  { %1344 = vmatpush3.bf16.msra.mxu0 %v1517_v11  ;;  %1260 = vmatprep.mubr.msk.f32.mxu0 %vm1475_vm2, %v1473_v3 }
 0x3df   :  { %1345 = vmatprep.subr.bf16.mxu0 %v1474_v10 }
 0x3e2   :  { %1347 = vmatpush3.bf16.msra.mxu0 %v1528_v13 }
 0x3e3   :  { %1354 = vmatprep.subr.bf16.mxu0 %v1474_v10 }
 0x4b0   :  { %v371_v50 = vpop.f32.mrb[2].mxu0 }
 0x4b1   :  { %v372_v51 = vadd.f32 %v371_v50, %v1574_v49  ;;  %v1240_v52 = vpop.f32.mrb[3].mxu0 }
 0x4b3   :  { %v376_v53 = vrot.slane %v372_v51, 7 }
 0x4b5   :  { %385 = vrot.lane.b32.xlu1 %v376_v53, %s1477_s3  ;;  %v378_v54 = vadd.f32 %v376_v53, %v1584_v31 }
 0x4b7   :  { %v379_v55 = vsub.f32 0.0, %v378_v54 }
 0x4b9   :  { %v380_v56 = vmul.f32 1.442695, %v379_v55 }
 0x4bb   :  { %1407 = vpow2.f32 %v380_v56 }
 0x4c5   :  { %v1408_v57 = vpop.eup %1407 }
 0x4c6   :  { %v382_v58 = vadd.f32 1.0, %v1408_v57 }
 0x4c8   :  { %1409 = vrcp.f32 %v382_v58 }
 0x4d2   :  { %v1410_v59 = vpop.eup %1409 }
 0x4d3   :  { %v395_v4 = vsub.f32 1.0, %v1410_v59  ;;  %v403_v6 = vmul.f32 %v1410_v59, %v401_v2 }
 0x527   :  { %v386_v60 = vpop.permute.xlu1 %385 }
 0x528   :  { %v388_v61 = vmul.f32 %v1410_v59, %v386_v60 }
 0x52a   :  { %390 = vrot.lane.b32.xlu1 %v388_v61, %s1477_s3 }
 0x59c   :  { %v391_v62 = vpop.permute.xlu1 %390 }
 0x59d   :  { %v393_v63 = vadd.f32 %v391_v62, %v1584_v31 }
 0x59f   :  { %1411 = vtanh.f32 %v393_v63 }
 0x5a9   :  { %v1412_v1 = vpop.eup %1411 }
 0x5aa   :  { %397 = vrot.lane.b32.xlu1 %v1412_v1, %s1478_s5 }
 0x61c   :  { %v398_v5 = vpop.permute.xlu1 %397 }
 0x61d   :  { %v400_v7 = vmul.f32 %v398_v5, %v395_v4 }
 0x61f   :  { %v404_v8 = vadd.f32 %v403_v6, %v400_v7 }
 0x621   :  { %v406_v9 = vrot.slane %v404_v8, 1  ;;  %v507_v29 = vrot.slane %v404_v8, 7 }
 0x623   :  { %407 = vrot.lane.b32.xlu1 %v406_v9, %s1478_s5 }
 0x695   :  { %v408_v12 = vpop.permute.xlu1 %407 }
 0x696   :  { %1250 = vmatmul.mubr.msk.f32.vlgmr.msra.gmra.mrb[2].mxu1 %vm108_vm3, %v408_v12 }
 0x697   :  { %1350 = vmatpush3.bf16.msra.mxu1 %v1517_v11  ;;  %1271 = vmatprep.mubr.msk.f32.mxu1 %vm1475_vm2, %v1473_v3 }
 0x698   :  { %1351 = vmatprep.subr.bf16.mxu1 %v1474_v10 }
 0x69b   :  { %1353 = vmatpush3.bf16.msra.mxu1 %v1528_v13 }
 0x69c   :  { %1360 = vmatprep.subr.bf16.mxu1 %v1474_v10 }
 0x769   :  { %v477_v14 = vpop.f32.mrb[2].mxu1 }
 0x76a   :  { %v478_v15 = vadd.f32 %v477_v14, %v1574_v49  ;;  %v1251_v16 = vpop.f32.mrb[3].mxu1 }
 0x76c   :  { %v482_v17 = vrot.slane %v478_v15, 6 }
 0x76e   :  { %491 = vrot.lane.b32.xlu0 %v482_v17, %s1477_s3  ;;  %v484_v18 = vadd.f32 %v482_v17, %v1584_v31 }
 0x770   :  { %v485_v19 = vsub.f32 0.0, %v484_v18 }
 0x772   :  { %v486_v20 = vmul.f32 1.442695, %v485_v19 }
 0x774   :  { %1413 = vpow2.f32 %v486_v20 }
 0x77e   :  { %v1414_v21 = vpop.eup %1413 }
 0x77f   :  { %v488_v22 = vadd.f32 1.0, %v1414_v21 }
 0x781   :  { %1415 = vrcp.f32 %v488_v22 }
 0x78b   :  { %v1416_v23 = vpop.eup %1415 }
 0x78c   :  { %v501_v30 = vsub.f32 1.0, %v1416_v23  ;;  %v509_v33 = vmul.f32 %v1416_v23, %v507_v29 }
 0x7e0   :  { %v492_v24 = vpop.permute.xlu0 %491 }
 0x7e1   :  { %v494_v25 = vmul.f32 %v1416_v23, %v492_v24 }
 0x7e3   :  { %496 = vrot.lane.b32.xlu1 %v494_v25, %s1477_s3 }
 0x855   :  { %v497_v26 = vpop.permute.xlu1 %496 }
 0x856   :  { %v499_v27 = vadd.f32 %v497_v26, %v1584_v31 }
 0x858   :  { %1417 = vtanh.f32 %v499_v27 }
 0x862   :  { %v1418_v28 = vpop.eup %1417 }
 0x863   :  { %503 = vrot.lane.b32.xlu0 %v1418_v28, %s1478_s5 }
 0x8d5   :  { %v504_v32 = vpop.permute.xlu0 %503 }
 0x8d6   :  { %v506_v34 = vmul.f32 %v504_v32, %v501_v30 }
 0x8d8   :  { %v510_v0 = vadd.f32 %v509_v33, %v506_v34 }
 0x8da   :  { %v512_v35 = vrot.slane %v510_v0, 2  ;;  %v613_v54 = vrot.slane %v510_v0, 7 }
 0x8dc   :  { %513 = vrot.lane.b32.xlu1 %v512_v35, %s1478_s5 }
 0x94e   :  { %v514_v36 = vpop.permute.xlu1 %513 }
 0x94f   :  { %1261 = vmatmul.mubr.msk.f32.vlgmr.msra.gmra.mrb[4].mxu0 %vm108_vm3, %v514_v36 }
 0x950   :  { %1356 = vmatpush3.bf16.msra.mxu0 %v1517_v11  ;;  %1282 = vmatprep.mubr.msk.f32.mxu0 %vm1475_vm2, %v1473_v3 }
 0x951   :  { %1357 = vmatprep.subr.bf16.mxu0 %v1474_v10 }
 0x954   :  { %1359 = vmatpush3.bf16.msra.mxu0 %v1528_v13 }
 0x955   :  { %1366 = vmatprep.subr.bf16.mxu0 %v1474_v10 }
 0xa22   :  { %v583_v37 = vpop.f32.mrb[4].mxu0 }
 0xa23   :  { %v584_v38 = vadd.f32 %v583_v37, %v1574_v49  ;;  %v1262_v39 = vpop.f32.mrb[5].mxu0 }
 0xa25   :  { %v588_v40 = vrot.slane %v584_v38, 5 }
 0xa27   :  { %597 = vrot.lane.b32.xlu0 %v588_v40, %s1477_s3  ;;  %v590_v41 = vadd.f32 %v588_v40, %v1584_v31 }
 0xa29   :  { %v591_v42 = vsub.f32 0.0, %v590_v41 }
 0xa2b   :  { %v592_v43 = vmul.f32 1.442695, %v591_v42 }
 0xa2d   :  { %1419 = vpow2.f32 %v592_v43 }
 0xa37   :  { %v1420_v44 = vpop.eup %1419 }
 0xa38   :  { %v594_v46 = vadd.f32 1.0, %v1420_v44 }
 0xa3a   :  { %1421 = vrcp.f32 %v594_v46 }
 0xa44   :  { %v1422_v47 = vpop.eup %1421 }
 0xa45   :  { %v607_v55 = vsub.f32 1.0, %v1422_v47  ;;  %v615_v57 = vmul.f32 %v1422_v47, %v613_v54 }
 0xa99   :  { %v598_v48 = vpop.permute.xlu0 %597 }
 0xa9a   :  { %v600_v50 = vmul.f32 %v1422_v47, %v598_v48 }
 0xa9c   :  { %602 = vrot.lane.b32.xlu1 %v600_v50, %s1477_s3 }
 0xb0e   :  { %v603_v51 = vpop.permute.xlu1 %602 }
 0xb0f   :  { %v605_v52 = vadd.f32 %v603_v51, %v1584_v31 }
 0xb11   :  { %1423 = vtanh.f32 %v605_v52 }
 0xb1b   :  { %v1424_v53 = vpop.eup %1423 }
 0xb1c   :  { %609 = vrot.lane.b32.xlu0 %v1424_v53, %s1478_s5 }
 0xb8e   :  { %v610_v56 = vpop.permute.xlu0 %609 }
 0xb8f   :  { %v612_v58 = vmul.f32 %v610_v56, %v607_v55 }
 0xb91   :  { %v616_v59 = vadd.f32 %v615_v57, %v612_v58 }
 0xb93   :  { %v618_v60 = vrot.slane %v616_v59, 3  ;;  %v719_v18 = vrot.slane %v616_v59, 7 }
 0xb95   :  { %619 = vrot.lane.b32.xlu1 %v618_v60, %s1478_s5 }
 0xc07   :  { %v620_v61 = vpop.permute.xlu1 %619 }
 0xc08   :  { %1272 = vmatmul.mubr.msk.f32.vlgmr.msra.gmra.mrb[4].mxu1 %vm108_vm3, %v620_v61 }
 0xc09   :  { %1362 = vmatpush3.bf16.msra.mxu1 %v1517_v11  ;;  %1293 = vmatprep.mubr.msk.f32.mxu1 %vm1475_vm2, %v1473_v3 }
 0xc0a   :  { %1363 = vmatprep.subr.bf16.mxu1 %v1474_v10 }
 0xc0d   :  { %1365 = vmatpush3.bf16.msra.mxu1 %v1528_v13 }
 0xc0e   :  { %1372 = vmatprep.subr.bf16.mxu1 %v1474_v10 }
 0xcdb   :  { %v689_v62 = vpop.f32.mrb[4].mxu1 }
 0xcdc   :  { %v690_v63 = vadd.f32 %v689_v62, %v1574_v49  ;;  %v1273_v1 = vpop.f32.mrb[5].mxu1 }
 0xcde   :  { %v694_v2 = vrot.slane %v690_v63, 4 }
 0xce0   :  { %703 = vrot.lane.b32.xlu0 %v694_v2, %s1477_s3  ;;  %v696_v4 = vadd.f32 %v694_v2, %v1584_v31 }
 0xce2   :  { %v697_v5 = vsub.f32 0.0, %v696_v4 }
 0xce4   :  { %v698_v6 = vmul.f32 1.442695, %v697_v5 }
 0xce6   :  { %1425 = vpow2.f32 %v698_v6 }
 0xcf0   :  { %v1426_v7 = vpop.eup %1425 }
 0xcf1   :  { %v700_v8 = vadd.f32 1.0, %v1426_v7 }
 0xcf3   :  { %1427 = vrcp.f32 %v700_v8 }
 0xcfd   :  { %v1428_v9 = vpop.eup %1427 }
 0xcfe   :  { %v713_v19 = vsub.f32 1.0, %v1428_v9  ;;  %v721_v21 = vmul.f32 %v1428_v9, %v719_v18 }
 0xd52   :  { %v704_v12 = vpop.permute.xlu0 %703 }
 0xd53   :  { %v706_v14 = vmul.f32 %v1428_v9, %v704_v12 }
 0xd55   :  { %708 = vrot.lane.b32.xlu1 %v706_v14, %s1477_s3 }
 0xdc7   :  { %v709_v15 = vpop.permute.xlu1 %708 }
 0xdc8   :  { %v711_v16 = vadd.f32 %v709_v15, %v1584_v31 }
 0xdca   :  { %1429 = vtanh.f32 %v711_v16 }
 0xdd4   :  { %v1430_v17 = vpop.eup %1429 }
 0xdd5   :  { %715 = vrot.lane.b32.xlu0 %v1430_v17, %s1478_s5 }
 0xe47   :  { %v716_v20 = vpop.permute.xlu0 %715 }
 0xe48   :  { %v718_v22 = vmul.f32 %v716_v20, %v713_v19 }
 0xe4a   :  { %v722_v23 = vadd.f32 %v721_v21, %v718_v22 }
 0xe4c   :  { %v724_v24 = vrot.slane %v722_v23, 4  ;;  %v825_v39 = vrot.slane %v722_v23, 7 }
 0xe4e   :  { %725 = vrot.lane.b32.xlu1 %v724_v24, %s1478_s5 }
 0xec0   :  { %v726_v25 = vpop.permute.xlu1 %725 }
 0xec1   :  { %1283 = vmatmul.mubr.msk.f32.vlgmr.msra.gmra.mrb[6].mxu0 %vm108_vm3, %v726_v25  ;;  %v20_v25 = vld [vmem:[%s1707_s1 + $0x40] sm:$0xff] }
 0xec2   :  { %1368 = vmatpush3.bf16.msra.mxu0 %v1517_v11  ;;  %1304 = vmatprep.mubr.msk.f32.mxu0 %vm1475_vm2, %v1473_v3 }
 0xec3   :  { %1369 = vmatprep.subr.bf16.mxu0 %v1474_v10 }
 0xec6   :  { %1371 = vmatpush3.bf16.msra.mxu0 %v1528_v13 }
 0xf94   :  { %v795_v26 = vpop.f32.mrb[6].mxu0 }
 0xf95   :  { %v796_v27 = vadd.f32 %v795_v26, %v1574_v49  ;;  %v1284_v28 = vpop.f32.mrb[7].mxu0  ;;  %v21_v26 = vld [vmem:[%s1707_s1 + $0x48] sm:$0xff] }
 0xf96   :  { %v1373_v28 = vpack.c.bf16 %v21_v26, %v20_v25 }
 0xf97   :  { %v800_v29 = vrot.slane %v796_v27, 3  ;;  %v22_v27 = vld [vmem:[%s1707_s1 + $0x50] sm:$0xff] }
 0xf99   :  { %809 = vrot.lane.b32.xlu0 %v800_v29, %s1477_s3  ;;  %v802_v30 = vadd.f32 %v800_v29, %v1584_v31  ;;  %v23_v29 = vld [vmem:[%s1707_s1 + $0x58] sm:$0xff]  ;;  %s1480_s1 = smov [#allocation3]  }
 0xf9a   :  { %s1140_s14 = sshll.u32 %s1480_s1, 4  ;;  %s1141_s14 = int_to_ptr.vmem [resolvable:$true] %s1140_s14 }
 0xf9b   :  { %v803_v32 = vsub.f32 0.0, %v802_v30  ;;  %s1449_s15 = scalar_lea.vmem %s1141_s14, 16  ;;  %s1453_s16 = scalar_lea.vmem %s1141_s14, 32 }
 0xf9c   :  { %p1450_p0 = scmp.ne.s32.totalorder %s1141_s14, %s1449_s15  ;;  %p1454_p1 = scmp.lt.s32.totalorder %s1141_s14, %s1141_s14 }
 0xf9d   :  { %v804_v33 = vmul.f32 1.442695, %v803_v32  ;;  %v1045_v32 = vrot.slane %v1562_v45, 4  ;;  %p1455_p2 = scmp.lt.s32.totalorder %s1453_s16, %s1449_s15 }
 0xf9f   :  { %1431 = vpow2.f32 %v804_v33  ;;  %p1456_p3 = por %p1455_p2, %p1454_p1 }
 0xfa1   :  { %p1457_p4 = pnand %p1456_p3, %p1450_p0 }
 0xfa9   :  { %v1432_v11 = vpop.eup %1431 }
 0xfaa   :  { %v806_v34 = vadd.f32 1.0, %v1432_v11 }
 0xfac   :  { %1433 = vrcp.f32 %v806_v34 }
 0xfb6   :  { %v1434_v0 = vpop.eup %1433 }
 0xfb7   :  { %v819_v40 = vsub.f32 1.0, %v1434_v0  ;;  %v827_v42 = vmul.f32 %v1434_v0, %v825_v39 }
0x100b   :  { %v810_v35 = vpop.permute.xlu0 %809 }
0x100c   :  { %v812_v36 = vmul.f32 %v1434_v0, %v810_v35 }
0x100e   :  { %814 = vrot.lane.b32.xlu1 %v812_v36, %s1477_s3 }
0x1080   :  { %v815_v13 = vpop.permute.xlu1 %814 }
0x1081   :  { %v817_v37 = vadd.f32 %v815_v13, %v1584_v31 }
0x1083   :  { %1435 = vtanh.f32 %v817_v37 }
0x108d   :  { %v1436_v38 = vpop.eup %1435 }
0x108e   :  { %821 = vrot.lane.b32.xlu0 %v1436_v38, %s1478_s5 }
0x1100   :  { %v822_v41 = vpop.permute.xlu0 %821 }
0x1101   :  { %v824_v43 = vmul.f32 %v822_v41, %v819_v40 }
0x1103   :  { %v828_v44 = vadd.f32 %v827_v42, %v824_v43 }
0x1105   :  { %v830_v46 = vrot.slane %v828_v44, 5  ;;  %v931_v63 = vrot.slane %v828_v44, 7 }
0x1107   :  { %831 = vrot.lane.b32.xlu1 %v830_v46, %s1478_s5 }
0x1179   :  { %v832_v47 = vpop.permute.xlu1 %831 }
0x117a   :  { %1294 = vmatmul.mubr.msk.f32.vlgmr.msra.gmra.mrb[6].mxu1 %vm108_vm3, %v832_v47 }
0x117b   :  { %1315 = vmatprep.mubr.msk.f32.mxu1 %vm1475_vm2, %v1473_v3  ;;  %1374 = vmatpush3.bf16.msra.mxu1 %v1373_v28 }
0x117c   :  { %1375 = vmatprep.subr.bf16.mxu1 %v1474_v10 }
0x124d   :  { %v901_v48 = vpop.f32.mrb[6].mxu1 }
0x124e   :  { %v902_v50 = vadd.f32 %v901_v48, %v1574_v49  ;;  %v1295_v51 = vpop.f32.mrb[7].mxu1 }
0x1250   :  { %v906_v52 = vrot.slane %v902_v50, 2 }
0x1252   :  { %915 = vrot.lane.b32.xlu0 %v906_v52, %s1477_s3  ;;  %v908_v53 = vadd.f32 %v906_v52, %v1584_v31 }
0x1254   :  { %v909_v54 = vsub.f32 0.0, %v908_v53 }
0x1256   :  { %v910_v55 = vmul.f32 1.442695, %v909_v54 }
0x1258   :  { %1437 = vpow2.f32 %v910_v55 }
0x1262   :  { %v1438_v56 = vpop.eup %1437 }
0x1263   :  { %v912_v57 = vadd.f32 1.0, %v1438_v56 }
0x1265   :  { %1439 = vrcp.f32 %v912_v57 }
0x126f   :  { %v1440_v58 = vpop.eup %1439 }
0x1270   :  { %v925_v1 = vsub.f32 1.0, %v1440_v58  ;;  %v933_v4 = vmul.f32 %v1440_v58, %v931_v63 }
0x12c4   :  { %v916_v59 = vpop.permute.xlu0 %915 }
0x12c5   :  { %v918_v60 = vmul.f32 %v1440_v58, %v916_v59 }
0x12c7   :  { %920 = vrot.lane.b32.xlu1 %v918_v60, %s1477_s3 }
0x1339   :  { %v921_v3 = vpop.permute.xlu1 %920 }
0x133a   :  { %v923_v61 = vadd.f32 %v921_v3, %v1584_v31 }
0x133c   :  { %1441 = vtanh.f32 %v923_v61 }
0x1346   :  { %v1442_v62 = vpop.eup %1441 }
0x1347   :  { %927 = vrot.lane.b32.xlu0 %v1442_v62, %s1478_s5 }
0x13b9   :  { %v928_v2 = vpop.permute.xlu0 %927 }
0x13ba   :  { %v930_v5 = vmul.f32 %v928_v2, %v925_v1 }
0x13bc   :  { %v934_v6 = vadd.f32 %v933_v4, %v930_v5 }
0x13be   :  { %v936_v7 = vrot.slane %v934_v6, 6  ;;  %v1037_v33 = vrot.slane %v934_v6, 7 }
0x13c0   :  { %937 = vrot.lane.b32.xlu1 %v936_v7, %s1478_s5 }
0x1432   :  { %v938_v8 = vpop.permute.xlu1 %937 }
0x1433   :  { %1305 = vmatmul.mubr.msk.f32.vlgmr.msra.gmra.mrb[8].mxu0 %vm108_vm3, %v938_v8 }
0x1506   :  { %v1007_v9 = vpop.f32.mrb[8].mxu0 }
0x1507   :  { %v1008_v12 = vadd.f32 %v1007_v9, %v1574_v49  ;;  %v1306_v14 = vpop.f32.mrb[9].mxu0 }
0x1509   :  { %v1012_v15 = vrot.slane %v1008_v12, 1 }
0x150b   :  { %1021 = vrot.lane.b32.xlu0 %v1012_v15, %s1477_s3  ;;  %v1014_v16 = vadd.f32 %v1012_v15, %v1584_v31 }
0x150d   :  { %v1015_v17 = vsub.f32 0.0, %v1014_v16 }
0x150f   :  { %v1016_v18 = vmul.f32 1.442695, %v1015_v17 }
0x1511   :  { %1443 = vpow2.f32 %v1016_v18 }
0x151b   :  { %v1444_v19 = vpop.eup %1443 }
0x151c   :  { %v1018_v20 = vadd.f32 1.0, %v1444_v19 }
0x151e   :  { %1445 = vrcp.f32 %v1018_v20 }
0x1528   :  { %v1446_v21 = vpop.eup %1445 }
0x1529   :  { %v1031_v11 = vsub.f32 1.0, %v1446_v21  ;;  %v1039_v0 = vmul.f32 %v1446_v21, %v1037_v33 }
0x157d   :  { %v1022_v22 = vpop.permute.xlu0 %1021 }
0x157e   :  { %v1024_v23 = vmul.f32 %v1446_v21, %v1022_v22 }
0x1580   :  { %1026 = vrot.lane.b32.xlu1 %v1024_v23, %s1477_s3 }
0x15f2   :  { %v1027_v24 = vpop.permute.xlu1 %1026 }
0x15f3   :  { %v1029_v49 = vadd.f32 %v1027_v24, %v1584_v31  ;;  %v1376_v31 = vpack.c.bf16 %v23_v29, %v22_v27 }
0x15f5   :  { %1447 = vtanh.f32 %v1029_v49  ;;  %1377 = vmatpush3.bf16.msra.mxu1 %v1376_v31 }
0x15ff   :  { %v1448_v30 = vpop.eup %1447 }
0x1600   :  { %1033 = vrot.lane.b32.xlu0 %v1448_v30, %s1478_s5 }
0x1604   :  { %1120 = vrot.lane.b32.xlu0 %v1045_v32, %s1479_s13 }
0x1608   :  { %1128 = vrot.lane.b32.xlu0 %v1045_v32, %s1478_s5 }
0x1672   :  { %v1034_v34 = vpop.permute.xlu0 %1033 }
0x1673   :  { %v1036_v35 = vmul.f32 %v1034_v34, %v1031_v11 }
0x1675   :  { %v1040_v36 = vadd.f32 %v1039_v0, %v1036_v35 }
0x1676   :  { %v1121_v45 = vpop.permute.xlu0 %1120 }
0x1677   :  { %v1042_v13 = vrot.slane %v1040_v36, 7 }
0x1679   :  { %1043 = vrot.lane.b32.xlu1 %v1042_v13, %s1478_s5 }
0x167a   :  { %v1129_v43 = vpop.permute.xlu0 %1128 }
0x16eb   :  { %v1044_v10 = vpop.permute.xlu1 %1043 }
0x16ec   :  { %1316 = vmatmul.mubr.msk.f32.vlgmr.msra.gmra.mrb[8].mxu1 %vm108_vm3, %v1044_v10 }
0x17bf   :  { %v1115_v37 = vpop.f32.mrb[8].mxu1 }
0x17c0   :  { %v1116_v38 = vadd.f32 %v1115_v37, %v1045_v32  ;;  %v1317_v39 = vpop.f32.mrb[9].mxu1 }
0x17c2   :  { %v1119_v40 = vmax.f32 %v1116_v38, 0.0 }
0x17c4   :  { %v1123_v41 = vmul.f32 %v1121_v45, %v1119_v40 }
0x17c6   :  { %v1125_v42 = vsel %vm1124_vm9, %v1123_v41, 0.0 }
0x17c7   :  { %1126 = vadd.xlane.f32.xlu1 %v1125_v42 }
0x1854   :  { %v1127_v44 = vpop.xlane.xlu1 %1126 }
0x1855   :  { %v1131_v46 = vadd.f32 %v1129_v43, %v1127_v44 }
0x1857   :  { %1133 = vst.msk [vmem:[#allocation3] sm:$0x1] %vm1132_vm10, %v1131_v46 }
0x1858   :  { %1460 = shalt.err (!%p1457_p4)
}
0x1859   :  { %s1461_s19 = scalar_lea.hbm %s1708_s2, 16 }
0x185a   :  { %p1462_p5 = scmp.ne.s32.totalorder %s1708_s2, %s1461_s19  ;;  %p1465_p6 = scmp.lt.u32.totalorder %s1461_s19, %s1708_s2 }
0x185c   :  { %p1467_p7 = pnand %p1465_p6, %p1462_p5 }
0x185e   :  { %1470 = shalt.err (!%p1467_p7)
}
0x185f   :  { %1143 = dma.vmem_to_hbm [thread:$0]  %s1141_s14, 16, %s1708_s2, [#allocation4]  }
0x1860   :  { %1471 = dma.done.wait [#allocation4], 16  }
0x1861   :  { %1472 = vsyncadd [#allocation4], 4294967280 }
0x1862   :  { %1147 = vsyncpa [#allocation4], 1 }

</bundles_post_ra>
